<compile_context>
chip_gen: v5e
topology: v5e:2x2
jax: 0.10.0
libtpu: 0.0.40
codegen_flags: <defaults>
</compile_context>

<pallas_src>
import math
import jax
import jax.numpy as jnp
from jax.experimental import pallas as pl
from jax.experimental.pallas import tpu as pltpu


# ---------------------------------------------------------------------------
# Kernel: broadcast-add of one flattened pe row onto a block of (b,c) slabs.
#   x_ref : (block_rows, S*D)   one row per (b, c) pair
#   pe_ref: (1, S*D)            constant across the grid (fetched once)
# ---------------------------------------------------------------------------
def pe_add_kernel(x_ref, pe_ref, o_ref):
    o_ref[...] = x_ref[...] + pe_ref[...]


def _choose_block_rows(rows, row_bytes, target_bytes=2 * 1024 * 1024):
    """Pick a sublane-legal block-row count targeting ~2 MiB tiles."""
    if rows < 8:
        return rows                      # block == full dim -> tiling rule OK
    tgt = max(1, target_bytes // max(row_bytes, 1))
    br = min(rows, tgt)
    br = max(8, (br // 8) * 8)           # multiple of 8 (sublane tiling)
    # Prefer >= 2 grid steps when possible so v7x's two TCs both run.
    if rows >= 16 and br >= rows:
        br = max(8, ((rows // 2) // 8) * 8)
    return br


@jax.jit
def positional_encoding_add(x, pe):
    """x: (B, C, S, D); pe: (max_len, D). Returns x + pe[:S] broadcast over (B, C)."""
    B, C, S, D = x.shape
    max_len = pe.shape[0]
    assert S <= max_len, f"sequence length {S} exceeds max_len {max_len}"

    rows = B * C
    row_elems = S * D
    row_bytes = row_elems * x.dtype.itemsize

    # Lane-dense flatten: one (b, c) slab per row, full S*D on the lane axis.
    x2 = x.reshape(rows, row_elems)
    pe_row = pe[:S, :].reshape(1, row_elems).astype(x.dtype)

    block_rows = _choose_block_rows(rows, row_bytes)
    n_blocks = pl.cdiv(rows, block_rows)

    out2 = pl.pallas_call(
        pe_add_kernel,
        out_shape=jax.ShapeDtypeStruct((rows, row_elems), x.dtype),
        grid=(n_blocks,),
        in_specs=[
            pl.BlockSpec((block_rows, row_elems), lambda i: (i, 0)),
            pl.BlockSpec((1, row_elems), lambda i: (0, 0)),   # constant block
        ],
        out_specs=pl.BlockSpec((block_rows, row_elems), lambda i: (i, 0)),
        compiler_params=pltpu.CompilerParams(
            dimension_semantics=("parallel",),
        ),
    )(x2, pe_row)

    return out2.reshape(B, C, S, D)


# ---------------------------------------------------------------------------
# Parameter (buffer) setup — matches PositionalEncoding.__init__ exactly.
# ---------------------------------------------------------------------------
def make_pe_table(d_model, max_len=2000, dtype=jnp.float32):
    position = jnp.arange(0, max_len, dtype=jnp.float32)[:, None]           # (max_len, 1)
    div_term = jnp.exp(
        jnp.arange(0, d_model, 2, dtype=jnp.float32) * (-math.log(10000.0) / d_model)
    )                                                                        # (ceil(d/2),)
    n_even = (d_model + 1) // 2   # columns 0::2
    n_odd = d_model // 2          # columns 1::2
    pe = jnp.zeros((max_len, d_model), dtype=jnp.float32)
    pe = pe.at[:, 0::2].set(jnp.sin(position * div_term[:n_even]))
    pe = pe.at[:, 1::2].set(jnp.cos(position * div_term[:n_odd]))
    return pe.astype(dtype)


# TODO(synk): the PyTorch module's `self.initial` lazy buffer tiling is Python-side
# state with no kernel equivalent; the broadcast add reproduces its math exactly.

if __name__ == "__main__":
    # Small shapes consistent with forward: x is (batch, dim, seq, d_model)
    B, C, S, D = 2, 4, 8, 32
    MAX_LEN = 2000

    key = jax.random.PRNGKey(0)
    x = jax.random.normal(key, (B, C, S, D), dtype=jnp.float32)

    pe = make_pe_table(D, max_len=MAX_LEN)

    out = positional_encoding_add(x, pe)
    out = jax.block_until_ready(out)

    # Reference check (plain JAX) against the PyTorch semantics.
    ref = x + pe[None, None, :S, :]
    assert out.shape == x.shape and out.dtype == x.dtype
    assert jnp.allclose(out, ref, atol=1e-6, rtol=1e-6)

    print("KERNEL_OK")
</pallas_src>

<mosaic_0001>
module attributes {stable_mosaic.version = 11 : i64} {
  func.func @pe_add_kernel(%arg0: i32, %arg1: memref<8x256xf32, #tpu.memory_space<vmem>>, %arg2: memref<1x256xf32, #tpu.memory_space<vmem>>, %arg3: memref<8x256xf32, #tpu.memory_space<vmem>>) attributes {dimension_semantics = [#tpu.dimension_semantics<parallel>], iteration_bounds = array<i64: 1>, scalar_prefetch = 0 : i64, scratch_operands = 0 : i64, tpu.core_type = #tpu.core_type<tc>, window_params = [{transform_indices = @transform_0, window_bounds = array<i64: 8, 256>}, {pipeline_mode = #tpu.pipeline_mode<synchronous>, transform_indices = @transform_1, window_bounds = array<i64: 1, 256>}, {transform_indices = @transform_2, window_bounds = array<i64: 8, 256>}]} {
    %c0 = arith.constant 0 : index
    %c0_0 = arith.constant 0 : index
    %0 = vector.load %arg1[%c0, %c0_0] : memref<8x256xf32, #tpu.memory_space<vmem>>, vector<8x256xf32>
    %c0_1 = arith.constant 0 : index
    %c0_2 = arith.constant 0 : index
    %1 = vector.load %arg2[%c0_1, %c0_2] : memref<1x256xf32, #tpu.memory_space<vmem>>, vector<1x256xf32>
    %2 = vector.broadcast %1 : vector<1x256xf32> to vector<8x256xf32>
    %3 = arith.addf %0, %2 : vector<8x256xf32>
    %c0_3 = arith.constant 0 : index
    %c0_4 = arith.constant 0 : index
    %4 = vector.load %arg3[%c0_3, %c0_4] : memref<8x256xf32, #tpu.memory_space<vmem>>, vector<8x256xf32>
    tpu.vector_store %arg3[%c0_3, %c0_4], %3 {strides = array<i32>} : memref<8x256xf32, #tpu.memory_space<vmem>>, vector<8x256xf32>,
    return
  }
  func.func @transform_0(%arg0: i32) -> (i32, i32) {
    %c0_i32 = arith.constant 0 : i32
    %c0_i32_0 = arith.constant 0 : i32
    return %arg0, %c0_i32 : i32, i32
  }
  func.func @transform_1(%arg0: i32) -> (i32, i32) {
    %c0_i32 = arith.constant 0 : i32
    %c0_i32_0 = arith.constant 0 : i32
    %c0_i32_1 = arith.constant 0 : i32
    return %c0_i32, %c0_i32_0 : i32, i32
  }
  func.func @transform_2(%arg0: i32) -> (i32, i32) {
    %c0_i32 = arith.constant 0 : i32
    %c0_i32_0 = arith.constant 0 : i32
    return %arg0, %c0_i32 : i32, i32
  }
}

</mosaic_0001>

<bundles_post_ra>
// kernel: positional_encoding_add.1
= control target key start
LH: loop header
LB: loop body
LE: loop exit
PB: predicated region body
PF: predicated region fallthrough
CT: control target
= control target key end

     0   :  { %s57_s0 = inlined_call_operand.vmem [shape: f32[8,256], index: 0, kind: input, shape index: {}]   ;;  %s58_s1 = inlined_call_operand.vmem [shape: f32[1,256], index: 1, kind: input, shape index: {}]   ;;  %s59_s2 = inlined_call_operand.vmem [shape: f32[8,256], index: 2, kind: output, shape index: {}]  }
   0x1   :  { %v11_v0 = vld [vmem:[%s57_s0] sm:$0xff]  ;;  %v12_v2 = vld [vmem:[%s57_s0 + $0x8] sm:$0xff] }
   0x2   :  { %v13_v1 = vld [vmem:[%s58_s1] sm:$0x3] }
   0x3   :  { %v15_v3 = vperm.slane %v13_v1, 0  ;;  %v16_v4 = vperm.slane %v13_v1, 1 }
   0x5   :  { %v19_v5 = vadd.f32 %v15_v3, %v11_v0  ;;  %v20_v6 = vadd.f32 %v16_v4, %v12_v2 }
   0x7   :  { %21 = vst [vmem:[%s59_s2] sm:$0xff] %v19_v5 }
   0x8   :  { %22 = vst [vmem:[%s59_s2 + $0x8] sm:$0xff] %v20_v6 }

</bundles_post_ra>
